<compile_context>
chip_gen: v7x
topology: tpu7x:2x2x1
jax: 0.10.0
libtpu: 0.0.40
codegen_flags: <defaults>
</compile_context>

<pallas_src>
import jax
import jax.numpy as jnp
from jax.experimental import pallas as pl
from jax.experimental.pallas import tpu as pltpu


_LANE_CANDIDATES = (2048, 1024, 512, 256, 128)
_TILE_BYTES = 2 * 1024 * 1024          # per-tile budget; x2 (dbl-buf) x2 (in+out)
_SMALL_FALLBACK_ELEMS = 64 * 1024


def _cdiv(a, b):
    return -(-a // b)


def _round_up(x, m):
    return _cdiv(x, m) * m


def pelu_kernel(alpha_ref, beta_ref, x_ref, o_ref):
    # Scalar parameters in SMEM; clamp-to-0.1 mirrors the PyTorch
    # `param.data -= (param.data < 0.1) * (param.data - 0.1)` trick.
    a = jnp.maximum(alpha_ref[0], jnp.float32(0.1))
    b = jnp.maximum(beta_ref[0], jnp.float32(0.1))
    inv_b = 1.0 / b            # scalar reciprocal, once per tile
    ab = a * inv_b             # alpha / beta, scalar

    x = x_ref[...].astype(jnp.float32)   # f32 compute (legal on v5e, exact on EUP)
    pos = ab * x
    neg = a * jnp.exp(x * inv_b) - a
    o_ref[...] = jnp.where(x >= 0, pos, neg).astype(o_ref.dtype)


def _pelu_jnp(x, alpha_s, beta_s):
    a = jnp.maximum(alpha_s[0], jnp.float32(0.1))
    b = jnp.maximum(beta_s[0], jnp.float32(0.1))
    xf = x.astype(jnp.float32)
    out = jnp.where(xf >= 0, (a / b) * xf, a * (jnp.exp(xf / b) - 1.0))
    return out.astype(x.dtype)


def pelu_forward(x, alpha, beta, *, force_pallas=False):
    """PELU forward. x: any shape (native dtype streamed); alpha, beta: (1,1,1,1)."""
    orig_shape = x.shape
    total = int(x.size)

    alpha_s = alpha.reshape(-1)[:1].astype(jnp.float32)   # (1,)
    beta_s = beta.reshape(-1)[:1].astype(jnp.float32)     # (1,)

    lane = next((l for l in _LANE_CANDIDATES if total % l == 0), None)

    # Fallback: tiny tensors (launch overhead dominates) or no lane-dense
    # factorization without padding.  Fused XLA elementwise is roofline there.
    if lane is None or (total < _SMALL_FALLBACK_ELEMS and not force_pallas):
        return _pelu_jnp(x, alpha_s, beta_s)

    rows = total // lane
    itemsize = jnp.dtype(x.dtype).itemsize
    sub = 8 if itemsize >= 4 else (16 if itemsize == 2 else 32)

    if rows <= sub:
        tr = rows                                          # single full-extent block
    else:
        tr_cap = max(sub, (_TILE_BYTES // (lane * itemsize)) // sub * sub)
        tr = min(tr_cap, _round_up(_cdiv(rows, 2), sub))   # >= 2 grid steps (v7x megacore)
    grid = (_cdiv(rows, tr),)                              # partial last block masked by Pallas

    x2d = x.reshape(rows, lane)                            # free reshape, no HBM pass

    out2d = pl.pallas_call(
        pelu_kernel,
        out_shape=jax.ShapeDtypeStruct((rows, lane), x.dtype),
        grid=grid,
        in_specs=[
            pl.BlockSpec(memory_space=pltpu.MemorySpace.SMEM),   # alpha scalar
            pl.BlockSpec(memory_space=pltpu.MemorySpace.SMEM),   # beta scalar
            pl.BlockSpec((tr, lane), lambda i: (i, 0)),          # streamed input
        ],
        out_specs=pl.BlockSpec((tr, lane), lambda i: (i, 0)),
        compiler_params=pltpu.CompilerParams(
            dimension_semantics=("parallel",),
        ),
    )(alpha_s, beta_s, x2d)

    return out2d.reshape(orig_shape)


def pelu_reference(x, alpha, beta):
    a = jnp.maximum(alpha.astype(jnp.float32), 0.1)
    b = jnp.maximum(beta.astype(jnp.float32), 0.1)
    xf = x.astype(jnp.float32)
    return jnp.where(xf >= 0, a / b * xf, a * (jnp.exp(xf / b) - 1.0))


if __name__ == "__main__":
    key = jax.random.PRNGKey(0)

    # Deterministic parameter init mirroring the module's __init__
    # (parameters_dimensions=(1,1,1,1)); beta < 0.1 exercises the clamp.
    # TODO(synk): the PyTorch module mutates its Parameters in place each
    # forward; here the clamp is applied functionally per call (stateless).
    alpha = jnp.ones((1, 1, 1, 1), jnp.float32) * 1.5
    beta = jnp.ones((1, 1, 1, 1), jnp.float32) * 0.05

    # Test 1: module-scale f32 input (2,4,16,16); force the Pallas path.
    x = jax.random.normal(key, (2, 4, 16, 16), dtype=jnp.float32)
    out = pelu_forward(x, alpha, beta, force_pallas=True)
    jax.block_until_ready(out)
    ref = pelu_reference(x, alpha, beta)
    assert out.shape == x.shape and out.dtype == x.dtype
    assert jnp.allclose(out, ref, atol=1e-5, rtol=1e-5)

    # Test 2: f32 input exercising a multi-step grid + masked partial block.
    k2 = jax.random.PRNGKey(0)
    x2 = jax.random.normal(k2, (2, 3, 40, 128), dtype=jnp.float32)
    out2 = pelu_forward(x2, alpha, beta, force_pallas=True)
    jax.block_until_ready(out2)
    ref2 = pelu_reference(x2, alpha, beta)
    assert jnp.allclose(out2, ref2, atol=1e-5, rtol=1e-5)

    # Test 3: bf16 input streamed in native dtype (f32 compute inside kernel).
    x3 = jax.random.normal(k2, (2, 3, 40, 128), dtype=jnp.bfloat16)
    out3 = pelu_forward(x3, alpha, beta, force_pallas=True)
    jax.block_until_ready(out3)
    ref3 = pelu_reference(x3, alpha, beta)
    assert out3.dtype == jnp.bfloat16
    assert jnp.allclose(out3.astype(jnp.float32), ref3, atol=3e-2, rtol=3e-2)

    print("KERNEL_OK")
</pallas_src>

<mosaic_0001>
module attributes {stable_mosaic.version = 11 : i64} {
  func.func @pelu_kernel(%arg0: i32, %arg1: memref<1xf32, #tpu.memory_space<smem>>, %arg2: memref<1xf32, #tpu.memory_space<smem>>, %arg3: memref<1x2048xf32, #tpu.memory_space<vmem>>, %arg4: memref<1x2048xf32, #tpu.memory_space<vmem>>) attributes {dimension_semantics = [#tpu.dimension_semantics<parallel>], iteration_bounds = array<i64: 1>, scalar_prefetch = 0 : i64, scratch_operands = 0 : i64, tpu.core_type = #tpu.core_type<tc>, window_params = [{transform_indices = @transform_0, window_bounds = array<i64: 1>}, {transform_indices = @transform_1, window_bounds = array<i64: 1>}, {transform_indices = @transform_2, window_bounds = array<i64: 1, 2048>}, {transform_indices = @transform_3, window_bounds = array<i64: 1, 2048>}]} {
    %c0 = arith.constant 0 : index
    %0 = memref.load %arg1[%c0] : memref<1xf32, #tpu.memory_space<smem>>
    %cst = arith.constant 1.000000e-01 : f32
    %1 = arith.maximumf %0, %cst : f32
    %c0_0 = arith.constant 0 : index
    %2 = memref.load %arg2[%c0_0] : memref<1xf32, #tpu.memory_space<smem>>
    %cst_1 = arith.constant 1.000000e-01 : f32
    %3 = arith.maximumf %2, %cst_1 : f32
    %cst_2 = arith.constant 1.000000e+00 : f32
    %4 = arith.divf %cst_2, %3 : f32
    %5 = arith.mulf %1, %4 : f32
    %c0_3 = arith.constant 0 : index
    %c0_4 = arith.constant 0 : index
    %6 = vector.load %arg3[%c0_3, %c0_4] : memref<1x2048xf32, #tpu.memory_space<vmem>>, vector<1x2048xf32>
    %7 = vector.broadcast %5 : f32 to vector<1x2048xf32>
    %8 = arith.mulf %7, %6 : vector<1x2048xf32>
    %9 = vector.broadcast %4 : f32 to vector<1x2048xf32>
    %10 = arith.mulf %6, %9 : vector<1x2048xf32>
    %11 = math.exp %10 : vector<1x2048xf32>
    %12 = vector.broadcast %1 : f32 to vector<1x2048xf32>
    %13 = arith.mulf %12, %11 : vector<1x2048xf32>
    %14 = vector.broadcast %1 : f32 to vector<1x2048xf32>
    %15 = arith.subf %13, %14 : vector<1x2048xf32>
    %cst_5 = arith.constant 0.000000e+00 : f32
    %16 = vector.broadcast %cst_5 : f32 to vector<1x2048xf32>
    %17 = arith.cmpf oge, %6, %16 : vector<1x2048xf32>
    %18 = arith.select %17, %8, %15 : vector<1x2048xi1>, vector<1x2048xf32>
    %c0_6 = arith.constant 0 : index
    %c0_7 = arith.constant 0 : index
    %19 = vector.load %arg4[%c0_6, %c0_7] : memref<1x2048xf32, #tpu.memory_space<vmem>>, vector<1x2048xf32>
    tpu.vector_store %arg4[%c0_6, %c0_7], %18 {strides = array<i32>} : memref<1x2048xf32, #tpu.memory_space<vmem>>, vector<1x2048xf32>,
    return
  }
  func.func @transform_0(%arg0: i32) -> i32 {
    %c0_i32 = arith.constant 0 : i32
    %c0_i32_0 = arith.constant 0 : i32
    return %c0_i32 : i32
  }
  func.func @transform_1(%arg0: i32) -> i32 {
    %c0_i32 = arith.constant 0 : i32
    %c0_i32_0 = arith.constant 0 : i32
    return %c0_i32 : i32
  }
  func.func @transform_2(%arg0: i32) -> (i32, i32) {
    %c0_i32 = arith.constant 0 : i32
    %c0_i32_0 = arith.constant 0 : i32
    return %arg0, %c0_i32 : i32, i32
  }
  func.func @transform_3(%arg0: i32) -> (i32, i32) {
    %c0_i32 = arith.constant 0 : i32
    %c0_i32_0 = arith.constant 0 : i32
    return %arg0, %c0_i32 : i32, i32
  }
}

</mosaic_0001>

<bundles_post_ra>
// kernel: tpu_custom_call.1
= control target key start
LH: loop header
LB: loop body
LE: loop exit
PB: predicated region body
PF: predicated region fallthrough
CT: control target
= control target key end

     0   :  { %10 = vsyncpa [#allocation5], 0  ;;  %s187_s0 = inlined_call_operand.<no memory space> [shape: f32[1], index: 0, kind: input, shape index: {}]   ;;  %s188_s1 = inlined_call_operand.<no memory space> [shape: f32[1], index: 1, kind: input, shape index: {}]   ;;  %s189_s2 = inlined_call_operand.hbm [shape: f32[1,2048], index: 2, kind: input, shape index: {}]   ;;  %s190_s3 = inlined_call_operand.hbm [shape: f32[1,2048], index: 3, kind: output, shape index: {}]  }
   0x1   :  { %11 = vsyncpa [#allocation6], 0  ;;  %s134_s12 = smov [#allocation4]   ;;  %s86_s16 = scalar_lea.hbm %s189_s2, 256 }
   0x2   :  { %s22_s13 = sshll.u32 %s134_s12, 4  ;;  %p87_p0 = scmp.ne.s32.totalorder %s189_s2, %s86_s16  ;;  %s23_s13 = int_to_ptr.vmem [resolvable:$true] %s22_s13 }
   0x3   :  { %p90_p1 = scmp.lt.u32.totalorder %s86_s16, %s189_s2 }
   0x5   :  { %p92_p2 = pnand %p90_p1, %p87_p0 }
   0x7   :  { %95 = shalt.err (!%p92_p2)
}
   0x8   :  { %s96_s21 = scalar_lea.vmem %s23_s13, 256  ;;  %p101_p4 = scmp.lt.s32.totalorder %s23_s13, %s23_s13 }
   0x9   :  { %p97_p3 = scmp.ne.s32.totalorder %s23_s13, %s96_s21  ;;  %p102_p5 = scmp.lt.s32.totalorder %s96_s21, %s96_s21 }
   0xb   :  { %p103_p6 = por %p102_p5, %p101_p4 }
   0xd   :  { %p104_p7 = pnand %p103_p6, %p97_p3 }
   0xf   :  { %107 = shalt.err (!%p104_p7)
}
  0x10   :  { %25 = dma.hbm_to_vmem [thread:$0]  %s189_s2, 256, %s23_s13, [#allocation5]  }
  0x11   :  { %130 = dma.done.wait [#allocation5], 256  }
  0x12   :  { %131 = vsyncadd [#allocation5], 4294967040  ;;  %s135_s24 = smov 0.1   ;;  %v37_v2 = vld [vmem:[#allocation4] sm:$0xff]  ;;  %v38_v3 = vld [vmem:[#allocation4 + $0x8] sm:$0xff] }
  0x13   :  { %s32_s27 = smax.f32 %s135_s24, %s188_s1  ;;  %s30_s30 = smax.f32 %s135_s24, %s187_s0  ;;  %vm54_vm0 = vcmp.ge.f32.partialorder %v37_v2, 0.0  ;;  %vm55_vm1 = vcmp.ge.f32.partialorder %v38_v3, 0.0 }
  0x14   :  { %v33_v0 = vstv %s32_s27  ;;  %v49_v9 = vstv %s30_s30  ;;  %s136_s1 = smov [#allocation7]  }
  0x15   :  { %80 = vrcp.f32 %v33_v0  ;;  %s66_s5 = sshll.u32 %s136_s1, 4  ;;  %s67_s5 = int_to_ptr.vmem [resolvable:$true] %s66_s5 }
  0x16   :  { %s108_s0 = scalar_lea.vmem %s67_s5, 256  ;;  %p113_p9 = scmp.lt.s32.totalorder %s67_s5, %s67_s5 }
  0x17   :  { %p109_p8 = scmp.ne.s32.totalorder %s67_s5, %s108_s0  ;;  %p114_p10 = scmp.lt.s32.totalorder %s108_s0, %s108_s0 }
  0x19   :  { %p115_p11 = por %p114_p10, %p113_p9 }
  0x1b   :  { %p116_p12 = pnand %p115_p11, %p109_p8 }
  0x1f   :  { %v81_v1 = vpop.eup %80 }
  0x20   :  { %75 = vpush %v81_v1 }
  0x51   :  { %s76_s28 = spop %75 }
  0x52   :  { %v42_v4 = vstv %s76_s28  ;;  %s36_s4 = smul.f32 %s76_s28, %s30_s30 }
  0x53   :  { %v43_v5 = vmul.f32 %v42_v4, %v37_v2  ;;  %v44_v6 = vmul.f32 %v42_v4, %v38_v3 }
  0x54   :  { %v39_v11 = vstv %s36_s4 }
  0x55   :  { %v45_v7 = vmul.f32 1.442695, %v43_v5  ;;  %v47_v8 = vmul.f32 1.442695, %v44_v6  ;;  %v40_v15 = vmul.f32 %v39_v11, %v37_v2  ;;  %v41_v17 = vmul.f32 %v39_v11, %v38_v3 }
  0x57   :  { %82 = vpow2.f32 %v45_v7 }
  0x58   :  { %84 = vpow2.f32 %v47_v8 }
  0x61   :  { %v83_v10 = vpop.eup %82 }
  0x62   :  { %v85_v12 = vpop.eup %84  ;;  %v50_v13 = vmul.f32 %v83_v10, %v49_v9 }
  0x63   :  { %v51_v14 = vmul.f32 %v85_v12, %v49_v9 }
  0x64   :  { %v52_v16 = vsub.f32 %v50_v13, %v49_v9 }
  0x65   :  { %v53_v18 = vsub.f32 %v51_v14, %v49_v9 }
  0x66   :  { %v56_v19 = vsel %vm54_vm0, %v40_v15, %v52_v16 }
  0x67   :  { %v57_v20 = vsel %vm55_vm1, %v41_v17, %v53_v18  ;;  %58 = vst [vmem:[#allocation7] sm:$0xff] %v56_v19 }
  0x68   :  { %59 = vst [vmem:[#allocation7 + $0x8] sm:$0xff] %v57_v20 }
  0x69   :  { %119 = shalt.err (!%p116_p12)
}
  0x6a   :  { %s120_s8 = scalar_lea.hbm %s190_s3, 256 }
  0x6b   :  { %p121_p13 = scmp.ne.s32.totalorder %s190_s3, %s120_s8  ;;  %p124_p0 = scmp.lt.u32.totalorder %s120_s8, %s190_s3 }
  0x6d   :  { %p126_p1 = pnand %p124_p0, %p121_p13 }
  0x6f   :  { %129 = shalt.err (!%p126_p1)
}
  0x70   :  { %69 = dma.vmem_to_hbm [thread:$0]  %s67_s5, 256, %s190_s3, [#allocation6]  }
  0x71   :  { %132 = dma.done.wait [#allocation6], 256  }
  0x72   :  { %133 = vsyncadd [#allocation6], 4294967040 }
  0x73   :  { %73 = vsyncpa [#allocation5], 1 }
  0x74   :  { %74 = vsyncpa [#allocation6], 1 }

</bundles_post_ra>
